<compile_context>
chip_gen: v5e
topology: v5e:2x2
jax: 0.10.0
libtpu: 0.0.40
codegen_flags: <defaults>
</compile_context>

<pallas_src>
import math
import functools

import jax
import jax.numpy as jnp
from jax.experimental import pallas as pl
from jax.experimental.pallas import tpu as pltpu


_SQRT_2_OVER_PI = math.sqrt(2.0 / math.pi)
# gelu_new: sqrt(2/pi) * (x + 0.044715*x^3)  ==  x * (C1 + C2*x*x)
_GELU_C1 = _SQRT_2_OVER_PI
_GELU_C2 = _SQRT_2_OVER_PI * 0.044715

_LANE = 128
_SUBLANE = 8
# Preferred lane-dense widths for the flattened 2-D view (wider = denser stores).
_PREFERRED_WIDTHS = (8192, 4096, 2048, 1024, 512, 256, 128)

# Per-block byte target (per buffer).  Raised from 2 MiB to 8 MiB per review.
_DEFAULT_TARGET_BLOCK_BYTES = 8 * 1024 * 1024
# Above this total size we guarantee multiple grid steps so pipelining
# (and v7x two-TensorCore sharding) actually engages.
_PIPELINE_THRESHOLD_BYTES = 2 * 1024 * 1024


def _tpu_generation():
    """Best-effort TPU generation (0 if unknown)."""
    try:
        kind = jax.devices()[0].device_kind.lower()
    except Exception:
        return 0
    for g in (7, 6, 5, 4):
        if (f"v{g}" in kind) or kind.startswith(f"tpu{g}") or (f"tpu {g}" in kind):
            return g
    return 0


def _physical_vmem_bytes():
    try:
        return int(pltpu.get_tpu_info().vmem_capacity_bytes)
    except Exception:
        # Conservative default: v7x has the smallest per-TC VMEM (64 MiB).
        return 64 * 1024 * 1024


def _apply_activation(x, hidden_act: str):
    act = hidden_act.lower()
    if act == "relu":
        return jnp.maximum(x, 0.0)
    elif act == "tanh":
        return jnp.tanh(x)
    elif act == "swish":
        return x * jax.nn.sigmoid(x)
    elif act == "gelu":
        # gelu_new (Google BERT / OpenAI GPT tanh approximation), constants folded.
        return 0.5 * x * (1.0 + jnp.tanh(x * (_GELU_C1 + _GELU_C2 * (x * x))))
    elif act == "leakyrelu":
        # torch F.leaky_relu default negative_slope = 0.01
        return jnp.where(x >= 0, x, 0.01 * x)
    else:
        raise ValueError(f"unknown activation: {hidden_act}")


def _activation_kernel(x_ref, o_ref, *, hidden_act: str, compute_dtype):
    x = x_ref[...]
    if compute_dtype is not None and x.dtype != compute_dtype:
        x = x.astype(compute_dtype)
    o_ref[...] = _apply_activation(x, hidden_act).astype(o_ref.dtype)


def _choose_layout(total):
    """Lane-dense 2-D view (rows, width) of the flat tensor, or None if the
    element count is not a multiple of 128 (-> flat 1-D path)."""
    for w in _PREFERRED_WIDTHS:
        if total % w == 0:
            return total // w, w
    return None


def _choose_block_rows(rows, width, itemsize, target_block_bytes, min_steps):
    row_bytes = max(width * itemsize, 1)
    tm = (target_block_bytes // row_bytes // _SUBLANE) * _SUBLANE
    tm = max(_SUBLANE, tm)
    # Force >= min_steps grid steps for tensors big enough to benefit from
    # pipelining / megacore sharding.
    if rows * row_bytes > _PIPELINE_THRESHOLD_BYTES:
        cap = max(_SUBLANE, (rows // (min_steps * _SUBLANE)) * _SUBLANE)
        tm = min(tm, cap)
    if tm >= rows:
        return rows  # block dim == full array dim is always allowed
    return int(tm)


def _choose_block_1d(total, itemsize, target_block_bytes, min_steps):
    chunk = _SUBLANE * _LANE  # 1024 elements: keeps non-boundary blocks aligned
    blk = (target_block_bytes // max(itemsize, 1) // chunk) * chunk
    blk = max(chunk, blk)
    if total * itemsize > _PIPELINE_THRESHOLD_BYTES:
        cap = max(chunk, (total // (min_steps * chunk)) * chunk)
        blk = min(blk, cap)
    if blk >= total:
        return total
    return int(blk)


def activation_function(x, hidden_act: str = "gelu", *,
                        target_block_bytes=None,
                        donate_input: bool = False):
    """Elementwise activation via a Pallas TPU kernel.

    Matches Activation_Function_Class(hidden_act)(x): same shape, same dtype.
    Set donate_input=True only if the caller genuinely donates x's buffer.
    """
    orig_shape = x.shape
    if x.size == 0:
        return x

    total = int(x.size)
    itemsize = jnp.dtype(x.dtype).itemsize

    gen = _tpu_generation()
    # v7x has 2 TensorCores; give each core several pipelined steps.
    min_steps = 8 if gen >= 7 else 4

    phys_vmem = _physical_vmem_bytes()
    vmem_budget = (phys_vmem * 3) // 4  # leave headroom for Mosaic scratch

    if target_block_bytes is None:
        target_block_bytes = min(_DEFAULT_TARGET_BLOCK_BYTES, vmem_budget // 6)
    target_block_bytes = max(int(target_block_bytes), _SUBLANE * _LANE * itemsize)

    # Compute-dtype policy: keep bf16 native on v6e/v7x (bf16 VPU/EUP),
    # upcast other sub-f32 floats (and bf16 on v5e/unknown) to f32.
    compute_dtype = None
    if jnp.issubdtype(x.dtype, jnp.floating) and itemsize < 4:
        if x.dtype == jnp.bfloat16 and gen >= 6:
            compute_dtype = None
        else:
            compute_dtype = jnp.float32

    kernel = functools.partial(_activation_kernel, hidden_act=hidden_act,
                               compute_dtype=compute_dtype)

    layout = _choose_layout(total)
    if layout is not None:
        rows, width = layout
        x_view = x.reshape(rows, width)
        tm = _choose_block_rows(rows, width, itemsize, target_block_bytes, min_steps)
        grid = (pl.cdiv(rows, tm),)
        block_bytes = tm * width * itemsize
        in_spec = pl.BlockSpec((tm, width), lambda i: (i, 0))
        out_spec = pl.BlockSpec((tm, width), lambda i: (i, 0))
        out_shape = jax.ShapeDtypeStruct((rows, width), x.dtype)
    else:
        # Element count not a multiple of 128: flat 1-D view keeps every
        # non-boundary block lane-dense and unmasked; only the last block is
        # masked (vs. masked stores on every row of a (rows, 33) layout).
        x_view = x.reshape(total)
        blk = _choose_block_1d(total, itemsize, target_block_bytes, min_steps)
        grid = (pl.cdiv(total, blk),)
        block_bytes = blk * itemsize
        in_spec = pl.BlockSpec((blk,), lambda i: (i,))
        out_spec = pl.BlockSpec((blk,), lambda i: (i,))
        out_shape = jax.ShapeDtypeStruct((total,), x.dtype)

    # in + out, double-buffered, plus headroom; never request more than
    # 0.75 x physical VMEM (keeps v7x's 64 MiB TC comfortably unsaturated).
    vmem_limit = int(min(vmem_budget, max(16 * 1024 * 1024, 6 * block_bytes)))

    out = pl.pallas_call(
        kernel,
        out_shape=out_shape,
        grid_spec=pltpu.PrefetchScalarGridSpec(
            num_scalar_prefetch=0,
            grid=grid,
            in_specs=[in_spec],
            out_specs=out_spec,
        ),
        compiler_params=pltpu.CompilerParams(
            dimension_semantics=("parallel",),
            vmem_limit_bytes=vmem_limit,
        ),
        input_output_aliases=({0: 0} if donate_input else {}),
    )(x_view)

    return out.reshape(orig_shape)


if __name__ == "__main__":
    ok = True

    # (batch, seq, hidden) consistent with the module's use in the ViT adapter MLP.
    x = jax.random.normal(jax.random.PRNGKey(0), (2, 8, 32), dtype=jnp.float32)
    for act in ["relu", "tanh", "swish", "gelu", "leakyrelu"]:
        out = jax.block_until_ready(activation_function(x, act))
        ref = _apply_activation(x, act)
        if not jnp.allclose(out, ref, atol=1e-5, rtol=1e-5):
            ok = False
            print(f"MISMATCH for {act} (f32 small)")

    # Ragged multi-block 2-D path (rows not divisible by block rows).
    x2 = jax.random.normal(jax.random.PRNGKey(1), (34, 16, 128), dtype=jnp.float32)
    out2 = jax.block_until_ready(
        activation_function(x2, "gelu", target_block_bytes=64 * 1024))
    ref2 = _apply_activation(x2, "gelu")
    if not jnp.allclose(out2, ref2, atol=1e-5, rtol=1e-5):
        ok = False
        print("MISMATCH for gelu (ragged multi-block 2-D)")

    # Element count not a multiple of 128 -> flat 1-D layout (single full block).
    x3 = jax.random.normal(jax.random.PRNGKey(2), (2, 8, 33), dtype=jnp.float32)
    out3 = jax.block_until_ready(activation_function(x3, "swish"))
    ref3 = _apply_activation(x3, "swish")
    if not jnp.allclose(out3, ref3, atol=1e-5, rtol=1e-5):
        ok = False
        print("MISMATCH for swish (non-128 total, 1-D full block)")

    # Flat 1-D layout with multiple blocks and a masked boundary block.
    x3b = jax.random.normal(jax.random.PRNGKey(4), (5, 7, 99), dtype=jnp.float32)
    out3b = jax.block_until_ready(
        activation_function(x3b, "leakyrelu", target_block_bytes=4096))
    ref3b = _apply_activation(x3b, "leakyrelu")
    if not jnp.allclose(out3b, ref3b, atol=1e-5, rtol=1e-5):
        ok = False
        print("MISMATCH for leakyrelu (1-D masked boundary)")

    # bf16 input: native bf16 math on v6e/v7x, f32 upcast on v5e/unknown.
    x4 = jax.random.normal(jax.random.PRNGKey(3), (2, 8, 64), dtype=jnp.bfloat16)
    out4 = jax.block_until_ready(activation_function(x4, "gelu"))
    ref4 = _apply_activation(x4.astype(jnp.float32), "gelu").astype(jnp.bfloat16)
    if not jnp.allclose(out4.astype(jnp.float32), ref4.astype(jnp.float32),
                        atol=5e-2, rtol=5e-2):
        ok = False
        print("MISMATCH for gelu (bf16)")

    # ViT-sized tensor (>2 MiB) to exercise the forced multi-step pipelined grid.
    x5 = jax.random.normal(jax.random.PRNGKey(5), (4, 197, 768), dtype=jnp.float32)
    out5 = jax.block_until_ready(activation_function(x5, "gelu"))
    ref5 = _apply_activation(x5, "gelu")
    if not jnp.allclose(out5, ref5, atol=1e-5, rtol=1e-5):
        ok = False
        print("MISMATCH for gelu (ViT-sized, pipelined grid)")

    if ok:
        print("KERNEL_OK")
</pallas_src>

<mosaic_0001>
module attributes {stable_mosaic.version = 11 : i64} {
  func.func @_activation_kernel(%arg0: i32, %arg1: memref<1x512xf32, #tpu.memory_space<vmem>>, %arg2: memref<1x512xf32, #tpu.memory_space<vmem>>) attributes {dimension_semantics = [#tpu.dimension_semantics<parallel>], iteration_bounds = array<i64: 1>, scalar_prefetch = 0 : i64, scratch_operands = 0 : i64, tpu.core_type = #tpu.core_type<tc>, window_params = [{transform_indices = @transform_0, window_bounds = array<i64: 1, 512>}, {transform_indices = @transform_1, window_bounds = array<i64: 1, 512>}]} {
    %c0 = arith.constant 0 : index
    %c0_0 = arith.constant 0 : index
    %0 = vector.load %arg1[%c0, %c0_0] : memref<1x512xf32, #tpu.memory_space<vmem>>, vector<1x512xf32>
    %cst = arith.constant 0.000000e+00 : f32
    %1 = vector.broadcast %cst : f32 to vector<1x512xf32>
    %2 = arith.maximumf %0, %1 : vector<1x512xf32>
    %c0_1 = arith.constant 0 : index
    %c0_2 = arith.constant 0 : index
    %3 = vector.load %arg2[%c0_1, %c0_2] : memref<1x512xf32, #tpu.memory_space<vmem>>, vector<1x512xf32>
    tpu.vector_store %arg2[%c0_1, %c0_2], %2 {strides = array<i32>} : memref<1x512xf32, #tpu.memory_space<vmem>>, vector<1x512xf32>,
    return
  }
  func.func @transform_0(%arg0: i32) -> (i32, i32) {
    %c0_i32 = arith.constant 0 : i32
    %c0_i32_0 = arith.constant 0 : i32
    return %arg0, %c0_i32 : i32, i32
  }
  func.func @transform_1(%arg0: i32) -> (i32, i32) {
    %c0_i32 = arith.constant 0 : i32
    %c0_i32_0 = arith.constant 0 : i32
    return %arg0, %c0_i32 : i32, i32
  }
}

</mosaic_0001>

<bundles_post_ra>
// kernel: tpu_custom_call.1
= control target key start
LH: loop header
LB: loop body
LE: loop exit
PB: predicated region body
PF: predicated region fallthrough
CT: control target
= control target key end

     0   :  { %6 = vsyncpa [#allocation3], 0  ;;  %s119_s0 = inlined_call_operand.hbm [shape: f32[1,512], index: 0, kind: input, shape index: {}]   ;;  %s120_s1 = inlined_call_operand.hbm [shape: f32[1,512], index: 1, kind: output, shape index: {}]  }
   0x1   :  { %7 = vsyncpa [#allocation4], 0  ;;  %s13_s8 = sshll.u32 %s119_s0, 4  ;;  %s101_s9 = smov [#allocation2]   ;;  %s14_s8 = int_to_ptr.hbm [resolvable:$true] %s13_s8 }
   0x2   :  { %s15_s10 = sshll.u32 %s101_s9, 4  ;;  %s16_s10 = int_to_ptr.vmem [resolvable:$true] %s15_s10 }
   0x3   :  { %18 = dma.hbm_to_vmem [thread:$0]  %s14_s8, 64, %s16_s10, [#allocation3]  }
   0x4   :  { %97 = dma.done.wait [#allocation3], 64  }
   0x5   :  { %98 = vsyncadd [#allocation3], 4294967232  ;;  %v25_v0 = vlaneseq  ;;  %s102_s11 = smov [#allocation5]   ;;  %s37_s15 = sshll.u32 %s120_s1, 4  ;;  %v23_v1 = vld [vmem:[#allocation2] sm:$0xf]  ;;  %s38_s15 = int_to_ptr.hbm [resolvable:$true] %s37_s15 }
   0x6   :  { %s35_s12 = sshll.u32 %s102_s11, 4  ;;  %v24_v2 = vmax.f32 %v23_v1, 0.0  ;;  %s36_s12 = int_to_ptr.vmem [resolvable:$true] %s35_s12 }
   0x7   :  { %vm27_vm0 = vcmp.lt.s32.totalorder %v25_v0, 512 }
   0x8   :  { %29 = vst.msk [vmem:[#allocation5] sm:$0xf] %vm27_vm0, %v24_v2 }
   0x9   :  { %40 = dma.vmem_to_hbm [thread:$0]  %s36_s12, 64, %s38_s15, [#allocation4]  }
   0xa   :  { %99 = dma.done.wait [#allocation4], 64  }
   0xb   :  { %100 = vsyncadd [#allocation4], 4294967232 }
   0xc   :  { %45 = vsyncpa [#allocation3], 1 }
   0xd   :  { %46 = vsyncpa [#allocation4], 1 }

</bundles_post_ra>
